<compile_context>
chip_gen: v7x
topology: tpu7x:2x2x1
jax: 0.10.0
libtpu: 0.0.40
codegen_flags: <defaults>
</compile_context>

<pallas_src>
import numpy as np
import jax
import jax.numpy as jnp
from jax.experimental import pallas as pl
from jax.experimental.pallas import tpu as pltpu


# ----------------------------------------------------------------------------
# Fused kernel: (folded) 1x1 conv chain + bilinear resize, one image per grid step
# ----------------------------------------------------------------------------
def fused_classifer_kernel(x_ref, w1_ref, shift_ref, w23_ref, b23_ref, bt_ref, o_ref):
    x = x_ref[0].astype(jnp.float32)                                        # (C, H*W)
    # dsconv1: 1x1 conv (BN scale pre-folded into w1 rows) + shift + ReLU
    h = jnp.dot(w1_ref[...], x, preferred_element_type=jnp.float32) + shift_ref[...]
    h = jnp.maximum(h, 0.0)                                                 # (C, H*W)
    # conv1 + conv[1] folded into one matmul (Dropout(0.1) is identity at inference)
    o = jnp.dot(w23_ref[...], h, preferred_element_type=jnp.float32) + b23_ref[...]  # (K, H*W)
    # bilinear align_corners=True resize == one matmul with kron(R, C)^T
    out = jnp.dot(o, bt_ref[...], preferred_element_type=jnp.float32)      # (K, Ho*Wo)
    o_ref[0] = out.astype(o_ref.dtype)


# ----------------------------------------------------------------------------
# Trace-time constants (numpy; sizes are static -> no device scatter ops)
# ----------------------------------------------------------------------------
def interp_matrix_np(out_size, in_size):
    """Exact row/col mixing matrix for bilinear interpolation with align_corners=True."""
    m = np.zeros((out_size, in_size), dtype=np.float32)
    if out_size == 1:
        src = np.zeros((1,), dtype=np.float64)
    else:
        src = np.arange(out_size, dtype=np.float64) * (in_size - 1) / (out_size - 1)
    lo = np.clip(np.floor(src).astype(np.int64), 0, in_size - 1)
    hi = np.minimum(lo + 1, in_size - 1)
    frac = (src - lo).astype(np.float32)
    rows = np.arange(out_size)
    np.add.at(m, (rows, lo), 1.0 - frac)
    np.add.at(m, (rows, hi), frac)
    return m


# ----------------------------------------------------------------------------
# Wrapper
# ----------------------------------------------------------------------------
def classifer_forward(x, size, params):
    N, C, H, W = x.shape
    K = params["w3"].shape[1]
    Ho, Wo = size
    HW, HoWo = H * W, Ho * Wo

    # Fold BatchNorm (eval mode) into the first conv: scale -> weight rows, keep shift.
    eps = 1e-5
    scale = params["bn_gamma"] / jnp.sqrt(params["bn_var"] + eps)
    shift = params["bn_beta"] - params["bn_mean"] * scale
    w1t = params["w1"].T * scale[:, None]                       # (C_out, C_in), channels-first
    shift_col = shift.reshape(C, 1)

    # Fold conv1 and conv[1] (no nonlinearity in between) into a single matmul.
    w23t = (params["w2"] @ params["w3"]).T                      # (K, C)
    b23_col = (params["b2"] @ params["w3"] + params["b3"]).reshape(K, 1)

    # Bilinear (align_corners=True) as a constant (H*W, Ho*Wo) matrix.
    r_mat = interp_matrix_np(Ho, H)
    c_mat = interp_matrix_np(Wo, W)
    bt = jnp.asarray(np.kron(r_mat, c_mat).T)                   # (H*W, Ho*Wo)
    # NOTE: kron matrix scales as (H*W)*(Ho*Wo); for very large production resolutions
    # a separable two-matmul resize would replace it (same math, smaller operands).

    # NCHW -> (N, C, H*W): pure reshape, no transpose needed for channels-first compute.
    x3 = x.reshape(N, C, HW)

    out_flat = pl.pallas_call(
        fused_classifer_kernel,
        out_shape=jax.ShapeDtypeStruct((N, K, HoWo), jnp.float32),
        grid=(N,),
        in_specs=[
            pl.BlockSpec((1, C, HW), lambda n: (n, 0, 0)),      # per-image channels-first slab
            pl.BlockSpec((C, C), lambda n: (0, 0)),             # w1 (BN-scale folded), resident
            pl.BlockSpec((C, 1), lambda n: (0, 0)),             # BN shift
            pl.BlockSpec((K, C), lambda n: (0, 0)),             # folded w2@w3 (transposed)
            pl.BlockSpec((K, 1), lambda n: (0, 0)),             # folded bias
            pl.BlockSpec((HW, HoWo), lambda n: (0, 0)),         # bilinear matrix, resident
        ],
        out_specs=pl.BlockSpec((1, K, HoWo), lambda n: (n, 0, 0)),  # lane-dense output block
        compiler_params=pltpu.CompilerParams(dimension_semantics=("parallel",)),
    )(x3, w1t, shift_col, w23t, b23_col, bt)

    return out_flat.reshape(N, K, Ho, Wo)


# ----------------------------------------------------------------------------
# Pure-JAX reference (unfolded math) used for a correctness check.
# ----------------------------------------------------------------------------
def reference_forward(x, size, params):
    eps = 1e-5
    scale = params["bn_gamma"] / jnp.sqrt(params["bn_var"] + eps)
    shift = params["bn_beta"] - params["bn_mean"] * scale
    h = jnp.einsum("nchw,cd->ndhw", x, params["w1"])
    h = h * scale[None, :, None, None] + shift[None, :, None, None]
    h = jnp.maximum(h, 0.0)
    h = jnp.einsum("nchw,cd->ndhw", h, params["w2"]) + params["b2"][None, :, None, None]
    h = jnp.einsum("nchw,ck->nkhw", h, params["w3"]) + params["b3"][None, :, None, None]
    Ho, Wo = size
    r = jnp.asarray(interp_matrix_np(Ho, x.shape[2]))
    c = jnp.asarray(interp_matrix_np(Wo, x.shape[3]))
    return jnp.einsum("oh,nkhw,pw->nkop", r, h, c)


if __name__ == "__main__":
    N, C, H, W = 2, 8, 16, 16      # dw_channels = 8
    K = 4                          # num_classes = 4
    size = (32, 32)

    keys = jax.random.split(jax.random.PRNGKey(0), 10)
    params = {
        # weights stored as (C_in, C_out) = PyTorch conv weight (C_out, C_in, 1, 1) reshaped & transposed
        "w1": 0.2 * jax.random.normal(keys[0], (C, C), jnp.float32),
        "bn_gamma": 1.0 + 0.1 * jax.random.normal(keys[1], (C,), jnp.float32),
        "bn_beta": 0.1 * jax.random.normal(keys[2], (C,), jnp.float32),
        "bn_mean": 0.05 * jax.random.normal(keys[3], (C,), jnp.float32),
        "bn_var": jnp.abs(0.5 + 0.1 * jax.random.normal(keys[4], (C,), jnp.float32)),
        "w2": 0.2 * jax.random.normal(keys[5], (C, C), jnp.float32),
        "b2": 0.05 * jax.random.normal(keys[6], (C,), jnp.float32),
        "w3": 0.2 * jax.random.normal(keys[7], (C, K), jnp.float32),
        "b3": 0.05 * jax.random.normal(keys[8], (K,), jnp.float32),
    }
    x = jax.random.normal(keys[9], (N, C, H, W), jnp.float32)

    out = jax.block_until_ready(classifer_forward(x, size, params))
    ref = jax.block_until_ready(reference_forward(x, size, params))

    assert out.shape == (N, K, size[0], size[1]), out.shape
    assert jnp.allclose(out, ref, rtol=1e-4, atol=1e-4), float(jnp.max(jnp.abs(out - ref)))
    print("KERNEL_OK")
</pallas_src>

<mosaic_0001>
module attributes {stable_mosaic.version = 11 : i64} {
  func.func @fused_classifer_kernel(%arg0: i32, %arg1: memref<1x8x256xf32, #tpu.memory_space<vmem>>, %arg2: memref<8x8xf32, #tpu.memory_space<vmem>>, %arg3: memref<8x1xf32, #tpu.memory_space<vmem>>, %arg4: memref<4x8xf32, #tpu.memory_space<vmem>>, %arg5: memref<4x1xf32, #tpu.memory_space<vmem>>, %arg6: memref<256x1024xf32, #tpu.memory_space<vmem>>, %arg7: memref<1x4x1024xf32, #tpu.memory_space<vmem>>) attributes {dimension_semantics = [#tpu.dimension_semantics<parallel>], iteration_bounds = array<i64: 2>, scalar_prefetch = 0 : i64, scratch_operands = 0 : i64, tpu.core_type = #tpu.core_type<tc>, window_params = [{transform_indices = @transform_0, window_bounds = array<i64: 1, 8, 256>}, {pipeline_mode = #tpu.pipeline_mode<synchronous>, transform_indices = @transform_1, window_bounds = array<i64: 8, 8>}, {pipeline_mode = #tpu.pipeline_mode<synchronous>, transform_indices = @transform_2, window_bounds = array<i64: 8, 1>}, {pipeline_mode = #tpu.pipeline_mode<synchronous>, transform_indices = @transform_3, window_bounds = array<i64: 4, 8>}, {pipeline_mode = #tpu.pipeline_mode<synchronous>, transform_indices = @transform_4, window_bounds = array<i64: 4, 1>}, {pipeline_mode = #tpu.pipeline_mode<synchronous>, transform_indices = @transform_5, window_bounds = array<i64: 256, 1024>}, {transform_indices = @transform_6, window_bounds = array<i64: 1, 4, 1024>}]} {
    %c0 = arith.constant 0 : index
    %c0_0 = arith.constant 0 : index
    %c0_1 = arith.constant 0 : index
    %0 = vector.load %arg1[%c0, %c0_0, %c0_1] : memref<1x8x256xf32, #tpu.memory_space<vmem>>, vector<1x8x256xf32>
    %1 = vector.shape_cast %0 : vector<1x8x256xf32> to vector<8x256xf32>
    %c0_2 = arith.constant 0 : index
    %c0_3 = arith.constant 0 : index
    %2 = vector.load %arg2[%c0_2, %c0_3] : memref<8x8xf32, #tpu.memory_space<vmem>>, vector<8x8xf32>
    %cst = arith.constant dense<0.000000e+00> : vector<8x256xf32>
    %3 = tpu.matmul %2, %1, %cst {dimension_numbers = #tpu.dot_dimension_numbers<[1], [0], [0], [1], [0, 0, 1, 1], [], []>} : vector<8x8xf32>, vector<8x256xf32>, vector<8x256xf32> -> vector<8x256xf32>
    %c0_4 = arith.constant 0 : index
    %c0_5 = arith.constant 0 : index
    %4 = vector.load %arg3[%c0_4, %c0_5] : memref<8x1xf32, #tpu.memory_space<vmem>>, vector<8x1xf32>
    %5 = vector.broadcast %4 : vector<8x1xf32> to vector<8x256xf32>
    %6 = arith.addf %3, %5 : vector<8x256xf32>
    %cst_6 = arith.constant 0.000000e+00 : f32
    %7 = vector.broadcast %cst_6 : f32 to vector<8x256xf32>
    %8 = arith.maximumf %6, %7 : vector<8x256xf32>
    %c0_7 = arith.constant 0 : index
    %c0_8 = arith.constant 0 : index
    %9 = vector.load %arg4[%c0_7, %c0_8] : memref<4x8xf32, #tpu.memory_space<vmem>>, vector<4x8xf32>
    %cst_9 = arith.constant dense<0.000000e+00> : vector<4x256xf32>
    %10 = tpu.matmul %9, %8, %cst_9 {dimension_numbers = #tpu.dot_dimension_numbers<[1], [0], [0], [1], [0, 0, 1, 1], [], []>} : vector<4x8xf32>, vector<8x256xf32>, vector<4x256xf32> -> vector<4x256xf32>
    %c0_10 = arith.constant 0 : index
    %c0_11 = arith.constant 0 : index
    %11 = vector.load %arg5[%c0_10, %c0_11] : memref<4x1xf32, #tpu.memory_space<vmem>>, vector<4x1xf32>
    %12 = vector.broadcast %11 : vector<4x1xf32> to vector<4x256xf32>
    %13 = arith.addf %10, %12 : vector<4x256xf32>
    %c0_12 = arith.constant 0 : index
    %c0_13 = arith.constant 0 : index
    %14 = vector.load %arg6[%c0_12, %c0_13] : memref<256x1024xf32, #tpu.memory_space<vmem>>, vector<256x1024xf32>
    %cst_14 = arith.constant dense<0.000000e+00> : vector<4x1024xf32>
    %15 = tpu.matmul %13, %14, %cst_14 {dimension_numbers = #tpu.dot_dimension_numbers<[1], [0], [0], [1], [0, 0, 1, 1], [], []>} : vector<4x256xf32>, vector<256x1024xf32>, vector<4x1024xf32> -> vector<4x1024xf32>
    %c0_15 = arith.constant 0 : index
    %c0_16 = arith.constant 0 : index
    %c0_17 = arith.constant 0 : index
    %16 = vector.load %arg7[%c0_15, %c0_16, %c0_17] : memref<1x4x1024xf32, #tpu.memory_space<vmem>>, vector<1x4x1024xf32>
    %17 = vector.shape_cast %16 : vector<1x4x1024xf32> to vector<4x1024xf32>
    %18 = vector.shape_cast %15 : vector<4x1024xf32> to vector<1x4x1024xf32>
    tpu.vector_store %arg7[%c0_15, %c0_16, %c0_17], %18 {strides = array<i32>} : memref<1x4x1024xf32, #tpu.memory_space<vmem>>, vector<1x4x1024xf32>,
    return
  }
  func.func @transform_0(%arg0: i32) -> (i32, i32, i32) {
    %c0_i32 = arith.constant 0 : i32
    %c0_i32_0 = arith.constant 0 : i32
    %c0_i32_1 = arith.constant 0 : i32
    return %arg0, %c0_i32, %c0_i32_0 : i32, i32, i32
  }
  func.func @transform_1(%arg0: i32) -> (i32, i32) {
    %c0_i32 = arith.constant 0 : i32
    %c0_i32_0 = arith.constant 0 : i32
    %c0_i32_1 = arith.constant 0 : i32
    return %c0_i32, %c0_i32_0 : i32, i32
  }
  func.func @transform_2(%arg0: i32) -> (i32, i32) {
    %c0_i32 = arith.constant 0 : i32
    %c0_i32_0 = arith.constant 0 : i32
    %c0_i32_1 = arith.constant 0 : i32
    return %c0_i32, %c0_i32_0 : i32, i32
  }
  func.func @transform_3(%arg0: i32) -> (i32, i32) {
    %c0_i32 = arith.constant 0 : i32
    %c0_i32_0 = arith.constant 0 : i32
    %c0_i32_1 = arith.constant 0 : i32
    return %c0_i32, %c0_i32_0 : i32, i32
  }
  func.func @transform_4(%arg0: i32) -> (i32, i32) {
    %c0_i32 = arith.constant 0 : i32
    %c0_i32_0 = arith.constant 0 : i32
    %c0_i32_1 = arith.constant 0 : i32
    return %c0_i32, %c0_i32_0 : i32, i32
  }
  func.func @transform_5(%arg0: i32) -> (i32, i32) {
    %c0_i32 = arith.constant 0 : i32
    %c0_i32_0 = arith.constant 0 : i32
    %c0_i32_1 = arith.constant 0 : i32
    return %c0_i32, %c0_i32_0 : i32, i32
  }
  func.func @transform_6(%arg0: i32) -> (i32, i32, i32) {
    %c0_i32 = arith.constant 0 : i32
    %c0_i32_0 = arith.constant 0 : i32
    %c0_i32_1 = arith.constant 0 : i32
    return %arg0, %c0_i32, %c0_i32_0 : i32, i32, i32
  }
}

</mosaic_0001>

<bundles_post_ra>
// kernel: tpu_custom_call.1
= control target key start
LH: loop header
LB: loop body
LE: loop exit
PB: predicated region body
PF: predicated region fallthrough
CT: control target
= control target key end

     0   :  { %11 = vsyncpa [#allocation3], 0  ;;  %s1832_s0 = inlined_call_operand.hbm [shape: f32[2,8,256], index: 0, kind: input, shape index: {}]   ;;  %s1833_s1 = inlined_call_operand.vmem [shape: f32[8,8], index: 1, kind: input, shape index: {}]   ;;  %s1834_s2 = inlined_call_operand.vmem [shape: f32[8,1], index: 2, kind: input, shape index: {}]   ;;  %s1835_s3 = inlined_call_operand.vmem [shape: f32[4,8], index: 3, kind: input, shape index: {}]   ;;  %s1836_s4 = inlined_call_operand.vmem [shape: f32[4,1], index: 4, kind: input, shape index: {}]   ;;  %s1837_s5 = inlined_call_operand.hbm [shape: f32[256,1024], index: 5, kind: input, shape index: {}]   ;;  %s1838_s6 = inlined_call_operand.hbm [shape: f32[2,4,1024], index: 6, kind: output, shape index: {}]  }
   0x1   :  { %13 = vsyncpa [#allocation3 + $0x1], 0 }
   0x2   :  { %14 = vsyncpa [#allocation6], 0 }
   0x3   :  { %15 = vsyncpa [#allocation4], 0 }
   0x4   :  { %17 = vsyncpa [#allocation4 + $0x1], 0  ;;  %s1615_s21 = smov 0   ;;  %s1617_s22 = smov 0  }
   0x5   :  { %s1619_s23 = smov 0   ;;  %s1621_s24 = smov 0  }
   0x6 LB: > { %s1636_s25 = sadd.s32 4294967295, %s1571_s24   ;;  %s1105_s26 = sadd.s32 4294967294, %s1571_s24   ;;  %s1571_s24 = sphi %s1621_s24, %s1858_s24   ;;  %s1567_s23 = sphi %s1619_s23, %s1857_s23   ;;  %s1563_s22 = sphi %s1617_s22, %s1856_s22   ;;  %s1559_s21 = sphi %s1615_s21, %s1855_s21  }
   0x7   : > { %p43_p0 = scmp.ne.s32.totalorder %s1563_s22, %s1559_s21  ;;  %p1839_p1 = scmp.eq.s32.totalorder %s1636_s25, 0 }
   0x8   : > { %p178_p3 = scmp.eq.s32.totalorder %s1105_s26, 1  ;;  %p1106_p5 = scmp.ge.s32.totalorder %s1571_s24, 1 }
   0x9   : > { %p1645_p4 = por %p1839_p1, %p43_p0  ;;  %p185_p7 = scmp.lt.s32.totalorder %s1571_s24, 3 }
   0xa   : > { %p1650_p6 = por %p178_p3, %p43_p0  ;;  %s1573_s30 = smov [#allocation5]  }
   0xb   : > { %s1842_s27 = scalar_select %p1645_p4, 1, 0 }
   0xc   : > { %s1843_s28 = scalar_select %p1650_p6, 1, 0 }
   0xd   : > { %p1655_p8 = pnand %p1106_p5, %p185_p7  ;;  %s209_s7 = sshll.u32 %s1573_s30, 4  ;;  %s1659_s7 = int_to_ptr.vmem [resolvable:$true] %s209_s7 }
   0xe   : > { %s1671_s9 = sadd.s32 1, %s1571_s24   ;;  %s30_s10 = sadd.s32 1, %s1567_s23 }
   0xf   : > { %s1844_s29 = scalar_select %p1655_p8, 1, 0 }
  0x10   : > { %p1389_p9 = pneg %p1655_p8  ;;  %s27_s11 = ssub.s32 %s1571_s24, %s1671_s9 }
  0x11   : > { %s1443_s14 = scalar_lea.hbm %s1837_s5, 32768 }
  0x12   : > { %p1666_p11 = pnand %p1389_p9, %p1839_p1  ;;  %p1444_p12 = scmp.ne.s32.totalorder %s1837_s5, %s1443_s14 }
  0x13   : > { %p1450_p5 = scmp.lt.u32.totalorder %s1443_s14, %s1837_s5 }
  0x14   : > { %p1445_p13 = pneg %p1666_p11 }
  0x16   : > { %p1446_p0 = pnand %p1445_p13, %p1444_p12 }
  0x18   : > { %p1447_p3 = pneg %p1446_p0 }
  0x1a   : > { %p1452_p7 = pnand %p1450_p5, %p1447_p3 }
  0x1c   : > { %1455 = shalt.err (!%p1452_p7)
}
  0x1d   : > { %s1456_s19 = scalar_lea.vmem %s1659_s7, 32768  ;;  %p1464_p2 = scmp.lt.s32.totalorder %s1659_s7, %s1659_s7 }
  0x1e   : > { %p1457_p9 = scmp.ne.s32.totalorder %s1659_s7, %s1456_s19  ;;  %p1465_p6 = scmp.lt.s32.totalorder %s1456_s19, %s1456_s19 }
  0x20   : > { %p1459_p10 = pnand %p1457_p9, %p1445_p13  ;;  %p1466_p4 = por %p1465_p6, %p1464_p2 }
  0x22   : > { %p1460_p1 = pneg %p1459_p10 }
  0x24   : > { %p1467_p8 = pnand %p1466_p4, %p1460_p1 }
  0x26   : > { %1470 = shalt.err (!%p1467_p8)
}
  0x27   : > { %s1574_s20 = smov 1024   ;;  %s1575_s26 = smov 64  }
  0x28   : > { %1392 = dma.hbm_to_vmem [thread:$0]  (!%p1666_p11), %s1837_s5, 32768, %s1659_s7, [#allocation6], %s1574_s20, %s1574_s20, %s1575_s26  }
  0x29   : > { %p28_p2 = scmp.eq.s32.totalorder %s27_s11, 0  ;;  %p37_p1 = scmp.ne.s32.totalorder %s1567_s23, %s1563_s22 }
  0x2a   : > { %p38_p4 = scmp.eq.s32.totalorder %s1571_s24, 0  ;;  %p1402_p6 = scmp.lt.s32.totalorder %s1571_s24, 2 }
  0x2b   : > { %s1702_s13 = scalar_select %p28_p2, %s1567_s23, %s30_s10  }
  0x2c   : > { %p39_p8 = por %p38_p4, %p37_p1  ;;  %p1846_p10 = scmp.eq.s32.totalorder %s1636_s25, 1 }
  0x2d   : > { %s223_s15 = sand.u32 1, %s1567_s23   ;;  %s1123_s16 = sshll.u32 %s1571_s24, 8 }
  0x2e   : > { %p1706_p12 = por %p1846_p10, %p37_p1  ;;  %s1109_s17 = sshll.u32 %s223_s15, 4 }
  0x2f   : > { %s1715_s19 = scalar_lea.hbm %s1832_s0, %s1123_s16  ;;  %s227_s7 = scalar_lea.vmem [#allocation2], %s1109_s17 }
  0x30   : > { %s235_s10 = sshll.u32 %s227_s7, 4  ;;  %p1717_p11 = pnand %p1402_p6, %p39_p8  ;;  %s1721_s10 = int_to_ptr.vmem [resolvable:$true] %s235_s10 }
  0x31   : > { %s224_s20 = scalar_lea.sflag [#allocation3], %s223_s15  ;;  %s1471_s26 = scalar_lea.hbm %s1715_s19, 256 }
  0x32   : > { %p1472_p13 = scmp.ne.s32.totalorder %s1715_s19, %s1471_s26  ;;  %p1473_p0 = pneg %p1717_p11 }
  0x33   : > { %s1476_s16 = scalar_lea.hbm %s1832_s0, 512  ;;  %p1477_p7 = scmp.lt.u32.totalorder %s1715_s19, %s1832_s0 }
  0x34   : > { %p1474_p3 = pnand %p1473_p0, %p1472_p13  ;;  %p1478_p9 = scmp.lt.u32.totalorder %s1476_s16, %s1471_s26 }
  0x35   : > { %p1480_p1 = scmp.lt.u32.totalorder %s1471_s26, %s1715_s19 }
  0x36   : > { %p1475_p5 = pneg %p1474_p3  ;;  %p1479_p2 = por %p1478_p9, %p1477_p7 }
  0x38   : > { %p1481_p4 = por %p1480_p1, %p1479_p2 }
  0x3a   : > { %p1482_p6 = pnand %p1481_p4, %p1475_p5 }
  0x3c   : > { %1485 = shalt.err (!%p1482_p6)
}
  0x3d   : > { %s1486_s15 = scalar_lea.vmem %s1721_s10, 256  ;;  %s1576_s18 = smov [#allocation2]  }
  0x3e   : > { %p1487_p8 = scmp.ne.s32.totalorder %s1721_s10, %s1486_s15  ;;  %s1491_s7 = sshll.u32 %s1576_s18, 4  ;;  %s1492_s7 = int_to_ptr.vmem [resolvable:$false] %s1491_s7 }
  0x3f   : > { %s1493_s30 = scalar_lea.vmem %s1492_s7, 512  ;;  %p1494_p3 = scmp.lt.s32.totalorder %s1721_s10, %s1492_s7 }
  0x40   : > { %p1489_p10 = pnand %p1487_p8, %p1473_p0  ;;  %p1495_p7 = scmp.lt.s32.totalorder %s1493_s30, %s1486_s15 }
  0x42   : > { %p1490_p13 = pneg %p1489_p10  ;;  %p1496_p9 = por %p1495_p7, %p1494_p3 }
  0x44   : > { %p1497_p2 = pnand %p1496_p9, %p1490_p13 }
  0x46   : > { %1500 = shalt.err (!%p1497_p2)
}
  0x47   : > { %1396 = dma.hbm_to_vmem [thread:$0]  (!%p1717_p11), %s1715_s19, 256, %s1721_s10, %s224_s20  }
  0x48   : > { %p1849_p5 = scmp.ne.s32.totalorder %s1844_s29, 0 }
  0x49   : > { %s1751_s26 = sand.u32 (!%p1849_p5), 1, %s1563_s22   ;;  %p1850_p0 = scmp.ne.s32.totalorder (!%p1849_p5), %s1842_s27, 0 }
  0x4a   : > { %244 = sbr.rel (%p1849_p5) target bundleno = 817 (0x331), region = 44  ;;  %s1113_s12 = sshll.u32 (!%p1849_p5), %s1751_s26, 4 }
  0x4b   : > { %s247_s16 = scalar_lea.sflag (!%p1849_p5), [#allocation3], %s1751_s26  ;;  %s250_s17 = scalar_lea.vmem (!%p1849_p5), [#allocation2], %s1113_s12 }
  0x51   : > { %1546 = dma.done.wait (%p1850_p0), %s247_s16, 256  }
  0x52   : > { %1548 = vsyncadd (%p1850_p0), %s247_s16, 4294967040  ;;  %p1851_p1 = scmp.eq.s32.totalorder %s1636_s25, 0 }
  0x54   : > { %1550 = dma.done.wait (%p1851_p1), [#allocation6], 32768   ;;  %p1852_p11 = pmov %p1851_p1 }
  0x55   : > { %v1577_v0 = vmov 0.0   ;;  %v1578_v1 = vmov 0   ;;  %v284_v2 = vld [vmem:[%s250_s17 + $0x8] sm:$0xff]  ;;  %v283_v3 = vld [vmem:[%s250_s17] sm:$0xff]  ;;  %vm292_vm0 = vcmask 64512   ;;  %s1115_s18 = sshll.u32 %s1751_s26, 5 }
  0x56   : > { %1552 = vsyncadd (%p1852_p11), [#allocation6], 4294934528  ;;  %360 = vmatprep.mubr.f32.mxu0 %v1577_v0  ;;  %1442 = vset.pattern.permute.xlu0 %v1578_v1  ;;  %v285_v4 = vld [vmem:[%s1833_s1] sm:$0xff]  ;;  %v451_v7 = vld [vmem:[#allocation5 + $0x8] sm:$0xff]  ;;  %s282_s7 = scalar_lea.vmem [#allocation7], %s1115_s18  ;;  %s1124_s30 = sshll.u32 %s1636_s25, 9 }
  0x57   : > { %443 = vmatprep.mubr.f32.mxu1 %v1577_v0  ;;  %296 = vmatprep.subr.mxu0 %v284_v2  ;;  %v286_v5 = vld [vmem:[%s1834_s2] sm:$0xff]  ;;  %v459_v8 = vld [vmem:[#allocation5 + $0x48] sm:$0xff]  ;;  %s1025_s12 = sshll.u32 %s282_s7, 4  ;;  %s1788_s29 = scalar_lea.hbm %s1838_s6, %s1124_s30  ;;  %s1790_s12 = int_to_ptr.vmem [resolvable:$true] %s1025_s12 }
  0x58   : > { %297 = vmatpush1.msra.mxu0 %v283_v3  ;;  %289 = vperm.xlu0 %1442, %v286_v5   ;;  %v370_v6 = vld [vmem:[%s1836_s4] sm:$0xf]  ;;  %v1125_v9 = vpack.c.bf16 %v459_v8, %v451_v7  ;;  %v467_v13 = vld [vmem:[#allocation5 + $0x88] sm:$0xff]  ;;  %s1011_s25 = scalar_lea.sflag [#allocation4], %s1751_s26  ;;  %s1501_s19 = scalar_lea.vmem %s1790_s12, 512 }
  0x59   : > { %1116 = vmatmul.mubr.msk.f32.vlgmr.msra.gmra.mrb[0].mxu0 %vm292_vm0, %v285_v4  ;;  %v450_v10 = vld [vmem:[#allocation5] sm:$0xff]  ;;  %v475_v14 = vld [vmem:[#allocation5 + $0xc8] sm:$0xff]  ;;  %p1502_p4 = scmp.ne.s32.totalorder %s1790_s12, %s1501_s19  ;;  %s1579_s27 = smov [#allocation7]  }
  0x5a   : > { %v458_v11 = vld [vmem:[#allocation5 + $0x40] sm:$0xff]  ;;  %1126 = vmatprep.subr.bf16.mxu0 %v1125_v9  ;;  %v1129_v15 = vpack.c.bf16 %v475_v14, %v467_v13  ;;  %v483_v19 = vld [vmem:[#allocation5 + $0x108] sm:$0xff]  ;;  %s1505_s10 = sshll.u32 %s1579_s27, 4  ;;  %s1506_s10 = int_to_ptr.vmem [resolvable:$false] %s1505_s10 }
  0x5b   : > { %v1127_v12 = vpack.c.bf16 %v458_v11, %v450_v10  ;;  %v466_v16 = vld [vmem:[#allocation5 + $0x80] sm:$0xff]  ;;  %v491_v20 = vld [vmem:[#allocation5 + $0x148] sm:$0xff]  ;;  %p1503_p6 = pnand %p1502_p4, %p1706_p12  ;;  %s1507_s11 = scalar_lea.vmem %s1506_s10, 1024 }
  0x5c   : > { %373 = vperm.xlu0 %1442, %v370_v6   ;;  %v474_v17 = vld [vmem:[#allocation5 + $0xc0] sm:$0xff]  ;;  %v1133_v21 = vpack.c.bf16 %v491_v20, %v483_v19  ;;  %v499_v25 = vld [vmem:[#allocation5 + $0x188] sm:$0xff]  ;;  %p1508_p10 = scmp.lt.s32.totalorder %s1790_s12, %s1506_s10  ;;  %p1509_p13 = scmp.lt.s32.totalorder %s1507_s11, %s1501_s19 }
  0x5d   : > { %1128 = vmatpush1.bf16.msra.mxu0 %v1127_v12  ;;  %v1131_v18 = vpack.c.bf16 %v474_v17, %v466_v16  ;;  %v482_v22 = vld [vmem:[#allocation5 + $0x100] sm:$0xff]  ;;  %v507_v26 = vld [vmem:[#allocation5 + $0x1c8] sm:$0xff]  ;;  %p1504_p8 = pneg %p1503_p6 }
  0x5e   : > { %1130 = vmatprep.subr.bf16.mxu0 %v1129_v15  ;;  %v490_v23 = vld [vmem:[#allocation5 + $0x140] sm:$0xff]  ;;  %v1137_v27 = vpack.c.bf16 %v507_v26, %v499_v25  ;;  %v515_v31 = vld [vmem:[#allocation5 + $0x208] sm:$0xff]  ;;  %p1510_p3 = por %p1509_p13, %p1508_p10 }
  0x5f   : > { %v1135_v24 = vpack.c.bf16 %v490_v23, %v482_v22  ;;  %v498_v28 = vld [vmem:[#allocation5 + $0x180] sm:$0xff]  ;;  %v523_v32 = vld [vmem:[#allocation5 + $0x248] sm:$0xff] }
  0x60   : > { %v506_v29 = vld [vmem:[#allocation5 + $0x1c0] sm:$0xff]  ;;  %v1141_v33 = vpack.c.bf16 %v523_v32, %v515_v31  ;;  %v531_v37 = vld [vmem:[#allocation5 + $0x288] sm:$0xff]  ;;  %p1511_p7 = pnand %p1510_p3, %p1504_p8 }
  0x61   : > { %1132 = vmatpush1.bf16.msra.mxu0 %v1131_v18  ;;  %v1139_v30 = vpack.c.bf16 %v506_v29, %v498_v28  ;;  %v514_v34 = vld [vmem:[#allocation5 + $0x200] sm:$0xff]  ;;  %v539_v38 = vld [vmem:[#allocation5 + $0x2c8] sm:$0xff] }
  0x62   : > { %1134 = vmatprep.subr.bf16.mxu0 %v1133_v21  ;;  %v522_v35 = vld [vmem:[#allocation5 + $0x240] sm:$0xff]  ;;  %v1145_v39 = vpack.c.bf16 %v539_v38, %v531_v37  ;;  %v547_v43 = vld [vmem:[#allocation5 + $0x308] sm:$0xff]  ;;  %v453_v37 = vld [vmem:[#allocation5 + $0x18] sm:$0xff] }
  0x63   : > { %v1143_v36 = vpack.c.bf16 %v522_v35, %v514_v34  ;;  %v530_v40 = vld [vmem:[#allocation5 + $0x280] sm:$0xff]  ;;  %v555_v44 = vld [vmem:[#allocation5 + $0x348] sm:$0xff]  ;;  %v461_v38 = vld [vmem:[#allocation5 + $0x58] sm:$0xff] }
  0x64   : > { %v538_v41 = vld [vmem:[#allocation5 + $0x2c0] sm:$0xff]  ;;  %v1149_v45 = vpack.c.bf16 %v555_v44, %v547_v43  ;;  %v563_v49 = vld [vmem:[#allocation5 + $0x388] sm:$0xff]  ;;  %v477_v43 = vld [vmem:[#allocation5 + $0xd8] sm:$0xff] }
  0x65   : > { %1136 = vmatpush1.bf16.msra.mxu0 %v1135_v24  ;;  %v1147_v42 = vpack.c.bf16 %v538_v41, %v530_v40  ;;  %v546_v46 = vld [vmem:[#allocation5 + $0x300] sm:$0xff]  ;;  %v571_v50 = vld [vmem:[#allocation5 + $0x3c8] sm:$0xff]  ;;  %v452_v40 = vld [vmem:[#allocation5 + $0x10] sm:$0xff] }
  0x66   : > { %1138 = vmatprep.subr.bf16.mxu0 %v1137_v27  ;;  %v554_v47 = vld [vmem:[#allocation5 + $0x340] sm:$0xff]  ;;  %v1153_v51 = vpack.c.bf16 %v571_v50, %v563_v49  ;;  %v579_v55 = vld [vmem:[#allocation5 + $0x408] sm:$0xff]  ;;  %v460_v41 = vld [vmem:[#allocation5 + $0x50] sm:$0xff] }
  0x67   : > { %v1151_v48 = vpack.c.bf16 %v554_v47, %v546_v46  ;;  %v562_v52 = vld [vmem:[#allocation5 + $0x380] sm:$0xff]  ;;  %v587_v56 = vld [vmem:[#allocation5 + $0x448] sm:$0xff]  ;;  %v468_v50 = vld [vmem:[#allocation5 + $0x90] sm:$0xff] }
  0x68   : > { %v570_v53 = vld [vmem:[#allocation5 + $0x3c0] sm:$0xff]  ;;  %v1157_v57 = vpack.c.bf16 %v587_v56, %v579_v55  ;;  %v595_v61 = vld [vmem:[#allocation5 + $0x488] sm:$0xff]  ;;  %v484_v56 = vld [vmem:[#allocation5 + $0x110] sm:$0xff] }
  0x69   : > { %1140 = vmatpush1.bf16.msra.mxu0 %v1139_v30  ;;  %v1155_v54 = vpack.c.bf16 %v570_v53, %v562_v52  ;;  %v578_v58 = vld [vmem:[#allocation5 + $0x400] sm:$0xff]  ;;  %v603_v62 = vld [vmem:[#allocation5 + $0x4c8] sm:$0xff]  ;;  %v485_v52 = vld [vmem:[#allocation5 + $0x118] sm:$0xff] }
  0x6a   : > { %1142 = vmatprep.subr.bf16.mxu0 %v1141_v33  ;;  %v586_v59 = vld [vmem:[#allocation5 + $0x440] sm:$0xff]  ;;  %v1161_v63 = vpack.c.bf16 %v603_v62, %v595_v61  ;;  %v611_v3 = vld [vmem:[#allocation5 + $0x508] sm:$0xff]  ;;  %v493_v53 = vld [vmem:[#allocation5 + $0x158] sm:$0xff] }
  0x6b   : > { %v1159_v60 = vpack.c.bf16 %v586_v59, %v578_v58  ;;  %v594_v0 = vld [vmem:[#allocation5 + $0x480] sm:$0xff]  ;;  %v619_v4 = vld [vmem:[#allocation5 + $0x548] sm:$0xff]  ;;  %v1197_v55 = vpack.c.bf16 %v493_v53, %v485_v52  ;;  %v501_v58 = vld [vmem:[#allocation5 + $0x198] sm:$0xff] }
  0x6c   : > { %v602_v1 = vld [vmem:[#allocation5 + $0x4c0] sm:$0xff]  ;;  %v1165_v5 = vpack.c.bf16 %v619_v4, %v611_v3  ;;  %v627_v9 = vld [vmem:[#allocation5 + $0x588] sm:$0xff]  ;;  %v509_v59 = vld [vmem:[#allocation5 + $0x1d8] sm:$0xff] }
  0x6d   : > { %1144 = vmatpush1.bf16.msra.mxu0 %v1143_v36  ;;  %v1163_v2 = vpack.c.bf16 %v602_v1, %v594_v0  ;;  %v610_v6 = vld [vmem:[#allocation5 + $0x500] sm:$0xff]  ;;  %v635_v10 = vld [vmem:[#allocation5 + $0x5c8] sm:$0xff]  ;;  %v1201_v61 = vpack.c.bf16 %v509_v59, %v501_v58  ;;  %v500_v62 = vld [vmem:[#allocation5 + $0x190] sm:$0xff] }
  0x6e   : > { %1146 = vmatprep.subr.bf16.mxu0 %v1145_v39  ;;  %v618_v7 = vld [vmem:[#allocation5 + $0x540] sm:$0xff]  ;;  %v1169_v11 = vpack.c.bf16 %v635_v10, %v627_v9  ;;  %v643_v15 = vld [vmem:[#allocation5 + $0x608] sm:$0xff]  ;;  %v517_v0 = vld [vmem:[#allocation5 + $0x218] sm:$0xff] }
  0x6f   : > { %v1167_v8 = vpack.c.bf16 %v618_v7, %v610_v6  ;;  %v626_v12 = vld [vmem:[#allocation5 + $0x580] sm:$0xff]  ;;  %v651_v16 = vld [vmem:[#allocation5 + $0x648] sm:$0xff]  ;;  %v525_v1 = vld [vmem:[#allocation5 + $0x258] sm:$0xff] }
  0x70   : > { %v634_v13 = vld [vmem:[#allocation5 + $0x5c0] sm:$0xff]  ;;  %v1173_v17 = vpack.c.bf16 %v651_v16, %v643_v15  ;;  %v659_v21 = vld [vmem:[#allocation5 + $0x688] sm:$0xff]  ;;  %v1205_v3 = vpack.c.bf16 %v525_v1, %v517_v0  ;;  %v516_v4 = vld [vmem:[#allocation5 + $0x210] sm:$0xff] }
  0x71   : > { %1148 = vmatpush1.bf16.msra.mxu0 %v1147_v42  ;;  %v1171_v14 = vpack.c.bf16 %v634_v13, %v626_v12  ;;  %v642_v18 = vld [vmem:[#allocation5 + $0x600] sm:$0xff]  ;;  %v667_v22 = vld [vmem:[#allocation5 + $0x6c8] sm:$0xff]  ;;  %v469_v42 = vld [vmem:[#allocation5 + $0x98] sm:$0xff] }
  0x72   : > { %1150 = vmatprep.subr.bf16.mxu0 %v1149_v45  ;;  %v650_v19 = vld [vmem:[#allocation5 + $0x640] sm:$0xff]  ;;  %v1177_v23 = vpack.c.bf16 %v667_v22, %v659_v21  ;;  %v675_v27 = vld [vmem:[#allocation5 + $0x708] sm:$0xff]  ;;  %v1189_v45 = vpack.c.bf16 %v461_v38, %v453_v37  ;;  %v1193_v49 = vpack.c.bf16 %v477_v43, %v469_v42  ;;  %v533_v6 = vld [vmem:[#allocation5 + $0x298] sm:$0xff] }
  0x73   : > { %v1175_v20 = vpack.c.bf16 %v650_v19, %v642_v18  ;;  %v658_v24 = vld [vmem:[#allocation5 + $0x680] sm:$0xff]  ;;  %v683_v28 = vld [vmem:[#allocation5 + $0x748] sm:$0xff]  ;;  %v541_v7 = vld [vmem:[#allocation5 + $0x2d8] sm:$0xff] }
  0x74   : > { %v666_v25 = vld [vmem:[#allocation5 + $0x6c0] sm:$0xff]  ;;  %v1181_v29 = vpack.c.bf16 %v683_v28, %v675_v27  ;;  %v1209_v9 = vpack.c.bf16 %v541_v7, %v533_v6  ;;  %v532_v10 = vld [vmem:[#allocation5 + $0x290] sm:$0xff]  ;;  %v549_v12 = vld [vmem:[#allocation5 + $0x318] sm:$0xff] }
  0x75   : > { %1152 = vmatpush1.bf16.msra.mxu0 %v1151_v48  ;;  %v1179_v26 = vpack.c.bf16 %v666_v25, %v658_v24  ;;  %v674_v30 = vld [vmem:[#allocation5 + $0x700] sm:$0xff]  ;;  %v1191_v48 = vpack.c.bf16 %v460_v41, %v452_v40  ;;  %v557_v13 = vld [vmem:[#allocation5 + $0x358] sm:$0xff]  ;;  %v548_v16 = vld [vmem:[#allocation5 + $0x310] sm:$0xff] }
  0x76   : > { %1154 = vmatprep.subr.bf16.mxu0 %v1153_v51  ;;  %v682_v31 = vld [vmem:[#allocation5 + $0x740] sm:$0xff]  ;;  %v476_v51 = vld [vmem:[#allocation5 + $0xd0] sm:$0xff]  ;;  %v1213_v15 = vpack.c.bf16 %v557_v13, %v549_v12  ;;  %v565_v18 = vld [vmem:[#allocation5 + $0x398] sm:$0xff] }
  0x77   : > { %v1183_v32 = vpack.c.bf16 %v682_v31, %v674_v30  ;;  %v369_v47 = vld [vmem:[%s1835_s3] sm:$0xf]  ;;  %v573_v19 = vld [vmem:[#allocation5 + $0x3d8] sm:$0xff]  ;;  %v564_v22 = vld [vmem:[#allocation5 + $0x390] sm:$0xff] }
  0x78   : > { %v1217_v21 = vpack.c.bf16 %v573_v19, %v565_v18  ;;  %v581_v24 = vld [vmem:[#allocation5 + $0x418] sm:$0xff]  ;;  %v580_v28 = vld [vmem:[#allocation5 + $0x410] sm:$0xff] }
  0x79   : > { %1156 = vmatpush1.bf16.msra.mxu0 %v1155_v54  ;;  %v1195_v54 = vpack.c.bf16 %v476_v51, %v468_v50  ;;  %v589_v25 = vld [vmem:[#allocation5 + $0x458] sm:$0xff]  ;;  %v612_v40 = vld [vmem:[#allocation5 + $0x510] sm:$0xff] }
  0x7a   : > { %1158 = vmatprep.subr.bf16.mxu0 %v1157_v57  ;;  %v492_v57 = vld [vmem:[#allocation5 + $0x150] sm:$0xff]  ;;  %v1221_v27 = vpack.c.bf16 %v589_v25, %v581_v24  ;;  %v597_v30 = vld [vmem:[#allocation5 + $0x498] sm:$0xff] }
  0x7b   : > { %v605_v31 = vld [vmem:[#allocation5 + $0x4d8] sm:$0xff]  ;;  %v620_v41 = vld [vmem:[#allocation5 + $0x550] sm:$0xff] }
  0x7c   : > { %v621_v37 = vld [vmem:[#allocation5 + $0x558] sm:$0xff]  ;;  %v644_v52 = vld [vmem:[#allocation5 + $0x610] sm:$0xff] }
  0x7d   : > { %1160 = vmatpush1.bf16.msra.mxu0 %v1159_v60  ;;  %v1199_v60 = vpack.c.bf16 %v492_v57, %v484_v56  ;;  %v629_v42 = vld [vmem:[#allocation5 + $0x598] sm:$0xff]  ;;  %v652_v53 = vld [vmem:[#allocation5 + $0x650] sm:$0xff] }
  0x7e   : > { %1162 = vmatprep.subr.bf16.mxu0 %v1161_v63  ;;  %v508_v63 = vld [vmem:[#allocation5 + $0x1d0] sm:$0xff]  ;;  %v637_v43 = vld [vmem:[#allocation5 + $0x5d8] sm:$0xff]  ;;  %v1239_v56 = vpack.c.bf16 %v652_v53, %v644_v52 }
  0x7f   : > { %v660_v58 = vld [vmem:[#allocation5 + $0x690] sm:$0xff]  ;;  %v701_v7 = vld [vmem:[#allocation5 + $0x7d8] sm:$0xff] }
  0x80   : > { %v668_v59 = vld [vmem:[#allocation5 + $0x6d0] sm:$0xff]  ;;  %v465_v19 = vld [vmem:[#allocation5 + $0x78] sm:$0xff] }
  0x81   : > { %1164 = vmatpush1.bf16.msra.mxu0 %v1163_v2  ;;  %v1203_v2 = vpack.c.bf16 %v508_v63, %v500_v62  ;;  %v1243_v62 = vpack.c.bf16 %v668_v59, %v660_v58  ;;  %v676_v0 = vld [vmem:[#allocation5 + $0x710] sm:$0xff] }
  0x82   : > { %1166 = vmatprep.subr.bf16.mxu0 %v1165_v5  ;;  %v524_v5 = vld [vmem:[#allocation5 + $0x250] sm:$0xff] }
  0x83   : > { %v684_v1 = vld [vmem:[#allocation5 + $0x750] sm:$0xff] }
  0x84   : > { %v692_v12 = vld [vmem:[#allocation5 + $0x790] sm:$0xff] }
  0x85   : > { %1168 = vmatpush1.bf16.msra.mxu0 %v1167_v8  ;;  %v1207_v8 = vpack.c.bf16 %v524_v5, %v516_v4  ;;  %v699_v4 = vld [vmem:[#allocation5 + $0x7c8] sm:$0xff]  ;;  %v693_v5 = vld [vmem:[#allocation5 + $0x798] sm:$0xff]  ;;  %v700_v13 = vld [vmem:[#allocation5 + $0x7d0] sm:$0xff] }
  0x86   : > { %1170 = vmatprep.subr.bf16.mxu0 %v1169_v11  ;;  %v540_v11 = vld [vmem:[#allocation5 + $0x2d0] sm:$0xff] }
  0x87   : > { %v464_v24 = vld [vmem:[#allocation5 + $0x70] sm:$0xff] }
  0x88   : > { %v488_v52 = vld [vmem:[#allocation5 + $0x130] sm:$0xff] }
  0x89   : > { %1172 = vmatpush1.bf16.msra.mxu0 %v1171_v14  ;;  %v1211_v14 = vpack.c.bf16 %v540_v11, %v532_v10  ;;  %v1249_v10 = vpack.c.bf16 %v701_v7, %v693_v5  ;;  %v496_v53 = vld [vmem:[#allocation5 + $0x170] sm:$0xff]  ;;  %v529_v5 = vld [vmem:[#allocation5 + $0x278] sm:$0xff] }
  0x8a   : > { %1174 = vmatprep.subr.bf16.mxu0 %v1173_v17  ;;  %v556_v17 = vld [vmem:[#allocation5 + $0x350] sm:$0xff]  ;;  %v1327_v59 = vpack.c.bf16 %v496_v53, %v488_v52  ;;  %v591_v52 = vld [vmem:[#allocation5 + $0x468] sm:$0xff]  ;;  %v585_v53 = vld [vmem:[#allocation5 + $0x438] sm:$0xff] }
  0x8d   : > { %1176 = vmatpush1.bf16.msra.mxu0 %v1175_v20  ;;  %v1215_v20 = vpack.c.bf16 %v556_v17, %v548_v16  ;;  %v463_v16 = vld [vmem:[#allocation5 + $0x68] sm:$0xff]  ;;  %v457_v17 = vld [vmem:[#allocation5 + $0x38] sm:$0xff] }
  0x8e   : > { %1178 = vmatprep.subr.bf16.mxu0 %v1177_v23  ;;  %v572_v23 = vld [vmem:[#allocation5 + $0x3d0] sm:$0xff] }
  0x91   : > { %1180 = vmatpush1.bf16.msra.mxu0 %v1179_v26  ;;  %v1219_v26 = vpack.c.bf16 %v572_v23, %v564_v22  ;;  %v462_v22 = vld [vmem:[#allocation5 + $0x60] sm:$0xff]  ;;  %v456_v23 = vld [vmem:[#allocation5 + $0x30] sm:$0xff] }
  0x92   : > { %1182 = vmatprep.subr.bf16.mxu0 %v1181_v29  ;;  %v588_v29 = vld [vmem:[#allocation5 + $0x450] sm:$0xff] }
  0x95   : > { %1184 = vmatpush1.bf16.msra.mxu0 %v1183_v32  ;;  %v1223_v32 = vpack.c.bf16 %v588_v29, %v580_v28  ;;  %v479_v29 = vld [vmem:[#allocation5 + $0xe8] sm:$0xff] }
  0xd7   : > { %v290_v33 = vpop.permute.xlu0 %289 }
 0x12c   : > { %v362_v34 = vpop.f32.mrb[0].mxu0 }
 0x12d   : > { %v363_v35 = vadd.f32 %v362_v34, %v290_v33  ;;  %v364_v36 = vpop.f32.mrb[1].mxu0  ;;  %v596_v34 = vld [vmem:[#allocation5 + $0x490] sm:$0xff] }
 0x12e   : > { %v365_v39 = vadd.f32 %v364_v36, %v290_v33  ;;  %v1225_v33 = vpack.c.bf16 %v605_v31, %v597_v30  ;;  %v613_v36 = vld [vmem:[#allocation5 + $0x518] sm:$0xff] }
 0x12f   : > { %v367_v46 = vmax.f32 %v363_v35, 0.0  ;;  %v604_v35 = vld [vmem:[#allocation5 + $0x4d0] sm:$0xff]  ;;  %v473_v30 = vld [vmem:[#allocation5 + $0xb8] sm:$0xff] }
 0x130   : > { %v368_v44 = vmax.f32 %v365_v39, 0.0  ;;  %v1227_v38 = vpack.c.bf16 %v604_v35, %v596_v34  ;;  %v1229_v39 = vpack.c.bf16 %v621_v37, %v613_v36  ;;  %v481_v31 = vld [vmem:[#allocation5 + $0xf8] sm:$0xff]  ;;  %v1319_v34 = vpack.c.bf16 %v464_v24, %v456_v23  ;;  %v470_v35 = vld [vmem:[#allocation5 + $0xa0] sm:$0xff]  ;;  %v536_v24 = vld [vmem:[#allocation5 + $0x2b0] sm:$0xff] }
 0x131   : > { %v478_v36 = vld [vmem:[#allocation5 + $0xe0] sm:$0xff] }
 0x132   : > { %379 = vmatprep.subr.mxu1 %v368_v44  ;;  %v1231_v44 = vpack.c.bf16 %v620_v41, %v612_v40  ;;  %v487_v40 = vld [vmem:[#allocation5 + $0x128] sm:$0xff] }
 0x133   : > { %380 = vmatpush1.msra.mxu1 %v367_v46  ;;  %v628_v46 = vld [vmem:[#allocation5 + $0x590] sm:$0xff] }
 0x134   : > { %1117 = vmatmul.mubr.msk.f32.vlgmr.msra.gmra.mrb[0].mxu1 %vm292_vm0, %v369_v47  ;;  %1190 = vmatprep.subr.bf16.mxu1 %v1189_v45  ;;  %v1233_v45 = vpack.c.bf16 %v637_v43, %v629_v42  ;;  %v636_v47 = vld [vmem:[#allocation5 + $0x5d0] sm:$0xff]  ;;  %v1321_v42 = vpack.c.bf16 %v481_v31, %v473_v30  ;;  %v495_v43 = vld [vmem:[#allocation5 + $0x168] sm:$0xff] }
 0x135   : > { %1192 = vmatpush1.bf16.msra.mxu1 %v1191_v48  ;;  %v645_v48 = vld [vmem:[#allocation5 + $0x618] sm:$0xff]  ;;  %v1235_v50 = vpack.c.bf16 %v636_v47, %v628_v46  ;;  %v1259_v46 = vpack.c.bf16 %v478_v36, %v470_v35  ;;  %v552_v36 = vld [vmem:[#allocation5 + $0x330] sm:$0xff] }
 0x136   : > { %1194 = vmatprep.subr.bf16.mxu1 %v1193_v49  ;;  %v653_v49 = vld [vmem:[#allocation5 + $0x658] sm:$0xff] }
 0x137   : > { %v1237_v51 = vpack.c.bf16 %v653_v49, %v645_v48  ;;  %v486_v48 = vld [vmem:[#allocation5 + $0x120] sm:$0xff] }
 0x138   : > { %v494_v49 = vld [vmem:[#allocation5 + $0x160] sm:$0xff] }
 0x139   : > { %1196 = vmatpush1.bf16.msra.mxu1 %v1195_v54  ;;  %v661_v54 = vld [vmem:[#allocation5 + $0x698] sm:$0xff]  ;;  %v1263_v58 = vpack.c.bf16 %v494_v49, %v486_v48  ;;  %v568_v49 = vld [vmem:[#allocation5 + $0x3b0] sm:$0xff] }
 0x13a   : > { %1198 = vmatprep.subr.bf16.mxu1 %v1197_v55  ;;  %v669_v55 = vld [vmem:[#allocation5 + $0x6d8] sm:$0xff] }
 0x13b   : > { %v1241_v57 = vpack.c.bf16 %v669_v55, %v661_v54  ;;  %v503_v54 = vld [vmem:[#allocation5 + $0x1a8] sm:$0xff] }
 0x13c   : > { %v511_v55 = vld [vmem:[#allocation5 + $0x1e8] sm:$0xff] }
 0x13d   : > { %1200 = vmatpush1.bf16.msra.mxu1 %v1199_v60  ;;  %v677_v60 = vld [vmem:[#allocation5 + $0x718] sm:$0xff] }
 0x13e   : > { %1202 = vmatprep.subr.bf16.mxu1 %v1201_v61  ;;  %v685_v61 = vld [vmem:[#allocation5 + $0x758] sm:$0xff] }
 0x13f   : > { %v1245_v63 = vpack.c.bf16 %v685_v61, %v677_v60  ;;  %v502_v60 = vld [vmem:[#allocation5 + $0x1a0] sm:$0xff] }
 0x140   : > { %v510_v61 = vld [vmem:[#allocation5 + $0x1e0] sm:$0xff] }
 0x141   : > { %1204 = vmatpush1.bf16.msra.mxu1 %v1203_v2  ;;  %v1247_v2 = vpack.c.bf16 %v684_v1, %v676_v0  ;;  %v504_v0 = vld [vmem:[#allocation5 + $0x1b0] sm:$0xff] }
 0x142   : > { %1206 = vmatprep.subr.bf16.mxu1 %v1205_v3  ;;  %v691_v3 = vld [vmem:[#allocation5 + $0x788] sm:$0xff]  ;;  %v512_v1 = vld [vmem:[#allocation5 + $0x1f0] sm:$0xff] }
 0x143   : > { %v1185_v6 = vpack.c.bf16 %v699_v4, %v691_v3  ;;  %v527_v3 = vld [vmem:[#allocation5 + $0x268] sm:$0xff]  ;;  %v521_v4 = vld [vmem:[#allocation5 + $0x238] sm:$0xff]  ;;  %v1331_v7 = vpack.c.bf16 %v512_v1, %v504_v0 }
 0x144   : > { %v607_v0 = vld [vmem:[#allocation5 + $0x4e8] sm:$0xff]  ;;  %v601_v1 = vld [vmem:[#allocation5 + $0x4b8] sm:$0xff] }
 0x145   : > { %1208 = vmatpush1.bf16.msra.mxu1 %v1207_v8  ;;  %v690_v8 = vld [vmem:[#allocation5 + $0x780] sm:$0xff]  ;;  %1186 = vmatprep.subr.bf16.mxu0 %v1185_v6  ;;  %v1267_v6 = vpack.c.bf16 %v510_v61, %v502_v60  ;;  %v584_v61 = vld [vmem:[#allocation5 + $0x430] sm:$0xff] }
 0x146   : > { %1210 = vmatprep.subr.bf16.mxu1 %v1209_v9  ;;  %v698_v9 = vld [vmem:[#allocation5 + $0x7c0] sm:$0xff] }
 0x147   : > { %v1187_v11 = vpack.c.bf16 %v698_v9, %v690_v8  ;;  %v518_v8 = vld [vmem:[#allocation5 + $0x220] sm:$0xff] }
 0x148   : > { %v526_v9 = vld [vmem:[#allocation5 + $0x260] sm:$0xff] }
 0x149   : > { %1212 = vmatpush1.bf16.msra.mxu1 %v1211_v14  ;;  %v1251_v14 = vpack.c.bf16 %v700_v13, %v692_v12  ;;  %1188 = vmatpush1.bf16.msra.mxu0 %v1187_v11  ;;  %v1333_v11 = vpack.c.bf16 %v529_v5, %v521_v4  ;;  %v520_v12 = vld [vmem:[#allocation5 + $0x230] sm:$0xff]  ;;  %v598_v5 = vld [vmem:[#allocation5 + $0x4a0] sm:$0xff] }
 0x14a   : > { %1214 = vmatprep.subr.bf16.mxu1 %v1213_v15  ;;  %v455_v15 = vld [vmem:[#allocation5 + $0x28] sm:$0xff]  ;;  %v528_v13 = vld [vmem:[#allocation5 + $0x270] sm:$0xff] }
 0x14b   : > { %v1253_v18 = vpack.c.bf16 %v463_v16, %v455_v15  ;;  %v543_v15 = vld [vmem:[#allocation5 + $0x2e8] sm:$0xff]  ;;  %v537_v16 = vld [vmem:[#allocation5 + $0x2b8] sm:$0xff] }
 0x14d   : > { %1216 = vmatpush1.bf16.msra.mxu1 %v1215_v20  ;;  %v1317_v20 = vpack.c.bf16 %v465_v19, %v457_v17  ;;  %1254 = vmatprep.subr.bf16.mxu0 %v1253_v18  ;;  %v545_v17 = vld [vmem:[#allocation5 + $0x2f8] sm:$0xff]  ;;  %v1271_v18 = vpack.c.bf16 %v526_v9, %v518_v8  ;;  %v1335_v19 = vpack.c.bf16 %v528_v13, %v520_v12  ;;  %v600_v9 = vld [vmem:[#allocation5 + $0x4b0] sm:$0xff]  ;;  %v623_v12 = vld [vmem:[#allocation5 + $0x568] sm:$0xff] }
 0x14e   : > { %1218 = vmatprep.subr.bf16.mxu1 %v1217_v21  ;;  %v454_v21 = vld [vmem:[#allocation5 + $0x20] sm:$0xff]  ;;  %v1337_v23 = vpack.c.bf16 %v545_v17, %v537_v16  ;;  %v617_v13 = vld [vmem:[#allocation5 + $0x538] sm:$0xff] }
 0x14f   : > { %v614_v17 = vld [vmem:[#allocation5 + $0x520] sm:$0xff] }
 0x151   : > { %1220 = vmatpush1.bf16.msra.mxu1 %v1219_v26  ;;  %v471_v26 = vld [vmem:[#allocation5 + $0xa8] sm:$0xff] }
 0x152   : > { %1222 = vmatprep.subr.bf16.mxu1 %v1221_v27  ;;  %v374_v27 = vpop.permute.xlu0 %373  ;;  %v1257_v41 = vpack.c.bf16 %v479_v29, %v471_v26  ;;  %v551_v26 = vld [vmem:[#allocation5 + $0x328] sm:$0xff]  ;;  %v561_v29 = vld [vmem:[#allocation5 + $0x378] sm:$0xff] }
 0x155   : > { %1224 = vmatpush1.bf16.msra.mxu1 %v1223_v32 }
 0x156   : > { %1226 = vmatprep.subr.bf16.mxu1 %v1225_v33  ;;  %v1255_v33 = vpack.c.bf16 %v462_v22, %v454_v21  ;;  %v542_v21 = vld [vmem:[#allocation5 + $0x2e0] sm:$0xff] }
 0x159   : > { %1228 = vmatpush1.bf16.msra.mxu1 %v1227_v38  ;;  %v472_v38 = vld [vmem:[#allocation5 + $0xb0] sm:$0xff] }
 0x15a   : > { %1230 = vmatprep.subr.bf16.mxu1 %v1229_v39  ;;  %v480_v39 = vld [vmem:[#allocation5 + $0xf0] sm:$0xff] }
 0x15b   : > { %v1323_v47 = vpack.c.bf16 %v480_v39, %v472_v38  ;;  %v560_v38 = vld [vmem:[#allocation5 + $0x370] sm:$0xff]  ;;  %v567_v39 = vld [vmem:[#allocation5 + $0x3a8] sm:$0xff] }
 0x15d   : > { %1232 = vmatpush1.bf16.msra.mxu1 %v1231_v44  ;;  %v489_v44 = vld [vmem:[#allocation5 + $0x138] sm:$0xff] }
 0x15e   : > { %1234 = vmatprep.subr.bf16.mxu1 %v1233_v45  ;;  %v497_v45 = vld [vmem:[#allocation5 + $0x178] sm:$0xff] }
 0x161   : > { %1236 = vmatpush1.bf16.msra.mxu1 %v1235_v50  ;;  %v1261_v50 = vpack.c.bf16 %v495_v43, %v487_v40  ;;  %v575_v40 = vld [vmem:[#allocation5 + $0x3e8] sm:$0xff] }
 0x162   : > { %1238 = vmatprep.subr.bf16.mxu1 %v1237_v51  ;;  %v1325_v51 = vpack.c.bf16 %v497_v45, %v489_v44  ;;  %v1343_v44 = vpack.c.bf16 %v560_v38, %v552_v36  ;;  %v566_v45 = vld [vmem:[#allocation5 + $0x3a0] sm:$0xff]  ;;  %v655_v36 = vld [vmem:[#allocation5 + $0x668] sm:$0xff]  ;;  %v649_v38 = vld [vmem:[#allocation5 + $0x638] sm:$0xff] }
 0x165   : > { %1240 = vmatpush1.bf16.msra.mxu1 %v1239_v56  ;;  %v505_v56 = vld [vmem:[#allocation5 + $0x1b8] sm:$0xff] }
 0x166   : > { %1242 = vmatprep.subr.bf16.mxu1 %v1241_v57  ;;  %v513_v57 = vld [vmem:[#allocation5 + $0x1f8] sm:$0xff] }
 0x169   : > { %1244 = vmatpush1.bf16.msra.mxu1 %v1243_v62  ;;  %v1265_v62 = vpack.c.bf16 %v511_v55, %v503_v54  ;;  %v593_v54 = vld [vmem:[#allocation5 + $0x478] sm:$0xff] }
 0x16a   : > { %1246 = vmatprep.subr.bf16.mxu1 %v1245_v63  ;;  %v1329_v63 = vpack.c.bf16 %v513_v57, %v505_v56  ;;  %v582_v57 = vld [vmem:[#allocation5 + $0x420] sm:$0xff]  ;;  %v1349_v60 = vpack.c.bf16 %v593_v54, %v585_v53 }
 0x16b   : > { %v662_v54 = vld [vmem:[#allocation5 + $0x6a0] sm:$0xff] }
 0x16d   : > { %1248 = vmatpush1.bf16.msra.mxu1 %v1247_v2  ;;  %v519_v2 = vld [vmem:[#allocation5 + $0x228] sm:$0xff] }
 0x16e   : > { %1250 = vmatprep.subr.bf16.mxu1 %v1249_v10  ;;  %v1269_v10 = vpack.c.bf16 %v527_v3, %v519_v2  ;;  %v609_v2 = vld [vmem:[#allocation5 + $0x4f8] sm:$0xff] }
 0x16f   : > { %v1353_v8 = vpack.c.bf16 %v609_v2, %v601_v1  ;;  %v678_v2 = vld [vmem:[#allocation5 + $0x720] sm:$0xff] }
 0x171   : > { %1252 = vmatpush1.bf16.msra.mxu1 %v1251_v14  ;;  %v535_v14 = vld [vmem:[#allocation5 + $0x2a8] sm:$0xff] }
 0x172   : > { %1318 = vmatprep.subr.bf16.mxu1 %v1317_v20  ;;  %v534_v20 = vld [vmem:[#allocation5 + $0x2a0] sm:$0xff]  ;;  %v1273_v22 = vpack.c.bf16 %v543_v15, %v535_v14  ;;  %v625_v14 = vld [vmem:[#allocation5 + $0x578] sm:$0xff] }
 0x173   : > { %v1275_v30 = vpack.c.bf16 %v542_v21, %v534_v20  ;;  %v1357_v20 = vpack.c.bf16 %v625_v14, %v617_v13  ;;  %v616_v21 = vld [vmem:[#allocation5 + $0x530] sm:$0xff]  ;;  %v694_v14 = vld [vmem:[#allocation5 + $0x7a0] sm:$0xff] }
 0x207   : > { %v445_v25 = vpop.f32.mrb[0].mxu1 }
 0x208   : > { %v447_v28 = vpop.f32.mrb[1].mxu1  ;;  %v1777_v37 = vadd.f32 %v445_v25, %v374_v27  ;;  %v544_v25 = vld [vmem:[#allocation5 + $0x2f0] sm:$0xff] }
 0x209   : > { %v448_v32 = vadd.f32 %v447_v28, %v374_v27  ;;  %v559_v27 = vld [vmem:[#allocation5 + $0x368] sm:$0xff]  ;;  %v553_v28 = vld [vmem:[#allocation5 + $0x338] sm:$0xff]  ;;  %v1339_v31 = vpack.c.bf16 %v544_v25, %v536_v24 }
 0x20a   : > { %v1341_v35 = vpack.c.bf16 %v561_v29, %v553_v28  ;;  %v639_v24 = vld [vmem:[#allocation5 + $0x5e8] sm:$0xff]  ;;  %v633_v25 = vld [vmem:[#allocation5 + $0x5b8] sm:$0xff]  ;;  %v630_v29 = vld [vmem:[#allocation5 + $0x5a0] sm:$0xff] }
 0x20b   : > { %770 = vmatprep.mubr.f32.mxu0 %v448_v32  ;;  %841 = vmatprep.mubr.f32.mxu1 %v448_v32 }
 0x20c   : > { %771 = vmatmul.mubr.f32.vlgmr.msra.gmra.mrb[2].mxu0 %v1777_v37  ;;  %842 = vmatmul.mubr.f32.vlgmr.msra.gmra.mrb[2].mxu1 %v1777_v37 }
 0x20d   : > { %1256 = vmatpush1.bf16.msra.mxu0 %v1255_v33  ;;  %1320 = vmatpush1.bf16.msra.mxu1 %v1319_v34  ;;  %v558_v33 = vld [vmem:[#allocation5 + $0x360] sm:$0xff]  ;;  %v1277_v34 = vpack.c.bf16 %v559_v27, %v551_v26  ;;  %v641_v26 = vld [vmem:[#allocation5 + $0x5f8] sm:$0xff] }
 0x20e   : > { %912 = vmatprep.mubr.f32.mxu0 %v448_v32  ;;  %983 = vmatprep.mubr.f32.mxu1 %v448_v32  ;;  %v550_v32 = vld [vmem:[#allocation5 + $0x320] sm:$0xff] }
 0x20f   : > { %1258 = vmatprep.subr.bf16.mxu0 %v1257_v41  ;;  %1322 = vmatprep.subr.bf16.mxu1 %v1321_v42  ;;  %v569_v41 = vld [vmem:[#allocation5 + $0x3b8] sm:$0xff]  ;;  %v1279_v43 = vpack.c.bf16 %v558_v33, %v550_v32  ;;  %v1361_v32 = vpack.c.bf16 %v641_v26, %v633_v25  ;;  %v632_v33 = vld [vmem:[#allocation5 + $0x5b0] sm:$0xff] }
 0x210   : > { %v577_v42 = vld [vmem:[#allocation5 + $0x3f8] sm:$0xff] }
 0x211   : > { %1260 = vmatpush1.bf16.msra.mxu0 %v1259_v46  ;;  %1324 = vmatpush1.bf16.msra.mxu1 %v1323_v47  ;;  %v574_v46 = vld [vmem:[#allocation5 + $0x3e0] sm:$0xff]  ;;  %v1281_v47 = vpack.c.bf16 %v575_v40, %v567_v39  ;;  %v1345_v48 = vpack.c.bf16 %v577_v42, %v569_v41  ;;  %v657_v39 = vld [vmem:[#allocation5 + $0x678] sm:$0xff] }
 0x212   : > { %1262 = vmatprep.subr.bf16.mxu0 %v1261_v50  ;;  %1326 = vmatprep.subr.bf16.mxu1 %v1325_v51  ;;  %v576_v50 = vld [vmem:[#allocation5 + $0x3f0] sm:$0xff]  ;;  %v583_v51 = vld [vmem:[#allocation5 + $0x428] sm:$0xff]  ;;  %v1283_v55 = vpack.c.bf16 %v574_v46, %v566_v45  ;;  %v646_v42 = vld [vmem:[#allocation5 + $0x620] sm:$0xff]  ;;  %v1365_v45 = vpack.c.bf16 %v657_v39, %v649_v38 }
 0x213   : > { %v1347_v56 = vpack.c.bf16 %v576_v50, %v568_v49  ;;  %v648_v46 = vld [vmem:[#allocation5 + $0x630] sm:$0xff]  ;;  %v671_v49 = vld [vmem:[#allocation5 + $0x6e8] sm:$0xff]  ;;  %v665_v50 = vld [vmem:[#allocation5 + $0x6b8] sm:$0xff] }
 0x215   : > { %1264 = vmatpush1.bf16.msra.mxu0 %v1263_v58  ;;  %1328 = vmatpush1.bf16.msra.mxu1 %v1327_v59  ;;  %v590_v58 = vld [vmem:[#allocation5 + $0x460] sm:$0xff]  ;;  %v1285_v59 = vpack.c.bf16 %v591_v52, %v583_v51  ;;  %v673_v51 = vld [vmem:[#allocation5 + $0x6f8] sm:$0xff] }
 0x216   : > { %1266 = vmatprep.subr.bf16.mxu0 %v1265_v62  ;;  %1330 = vmatprep.subr.bf16.mxu1 %v1329_v63  ;;  %v592_v62 = vld [vmem:[#allocation5 + $0x470] sm:$0xff]  ;;  %v599_v63 = vld [vmem:[#allocation5 + $0x4a8] sm:$0xff]  ;;  %v1287_v3 = vpack.c.bf16 %v590_v58, %v582_v57  ;;  %v1369_v57 = vpack.c.bf16 %v673_v51, %v665_v50 }
 0x217   : > { %v1351_v4 = vpack.c.bf16 %v592_v62, %v584_v61  ;;  %v664_v58 = vld [vmem:[#allocation5 + $0x6b0] sm:$0xff]  ;;  %v687_v61 = vld [vmem:[#allocation5 + $0x768] sm:$0xff]  ;;  %v681_v62 = vld [vmem:[#allocation5 + $0x738] sm:$0xff] }
 0x219   : > { %1268 = vmatpush1.bf16.msra.mxu0 %v1267_v6  ;;  %1332 = vmatpush1.bf16.msra.mxu1 %v1331_v7  ;;  %v606_v6 = vld [vmem:[#allocation5 + $0x4e0] sm:$0xff]  ;;  %v1289_v7 = vpack.c.bf16 %v607_v0, %v599_v63  ;;  %v689_v63 = vld [vmem:[#allocation5 + $0x778] sm:$0xff] }
 0x21a   : > { %1270 = vmatprep.subr.bf16.mxu0 %v1269_v10  ;;  %1334 = vmatprep.subr.bf16.mxu1 %v1333_v11  ;;  %v608_v10 = vld [vmem:[#allocation5 + $0x4f0] sm:$0xff]  ;;  %v615_v11 = vld [vmem:[#allocation5 + $0x528] sm:$0xff]  ;;  %v1291_v15 = vpack.c.bf16 %v606_v6, %v598_v5  ;;  %v1373_v5 = vpack.c.bf16 %v689_v63, %v681_v62 }
 0x21b   : > { %v1355_v16 = vpack.c.bf16 %v608_v10, %v600_v9  ;;  %v680_v6 = vld [vmem:[#allocation5 + $0x730] sm:$0xff]  ;;  %v703_v9 = vld [vmem:[#allocation5 + $0x7e8] sm:$0xff]  ;;  %v697_v10 = vld [vmem:[#allocation5 + $0x7b8] sm:$0xff] }
 0x21d   : > { %1272 = vmatpush1.bf16.msra.mxu0 %v1271_v18  ;;  %1336 = vmatpush1.bf16.msra.mxu1 %v1335_v19  ;;  %v622_v18 = vld [vmem:[#allocation5 + $0x560] sm:$0xff]  ;;  %v1293_v19 = vpack.c.bf16 %v623_v12, %v615_v11  ;;  %v705_v11 = vld [vmem:[#allocation5 + $0x7f8] sm:$0xff] }
 0x21e   : > { %1274 = vmatprep.subr.bf16.mxu0 %v1273_v22  ;;  %1338 = vmatprep.subr.bf16.mxu1 %v1337_v23  ;;  %v624_v22 = vld [vmem:[#allocation5 + $0x570] sm:$0xff]  ;;  %v631_v23 = vld [vmem:[#allocation5 + $0x5a8] sm:$0xff]  ;;  %v1295_v27 = vpack.c.bf16 %v622_v18, %v614_v17  ;;  %v702_v17 = vld [vmem:[#allocation5 + $0x7e0] sm:$0xff] }
 0x21f   : > { %v1359_v28 = vpack.c.bf16 %v624_v22, %v616_v21  ;;  %v696_v18 = vld [vmem:[#allocation5 + $0x7b0] sm:$0xff] }
 0x221   : > { %1276 = vmatpush1.bf16.msra.mxu0 %v1275_v30  ;;  %1340 = vmatpush1.bf16.msra.mxu1 %v1339_v31  ;;  %v638_v30 = vld [vmem:[#allocation5 + $0x5e0] sm:$0xff]  ;;  %v1297_v31 = vpack.c.bf16 %v639_v24, %v631_v23 }
 0x222   : > { %1278 = vmatprep.subr.bf16.mxu0 %v1277_v34  ;;  %1342 = vmatprep.subr.bf16.mxu1 %v1341_v35  ;;  %v640_v34 = vld [vmem:[#allocation5 + $0x5f0] sm:$0xff]  ;;  %v647_v35 = vld [vmem:[#allocation5 + $0x628] sm:$0xff]  ;;  %v1299_v40 = vpack.c.bf16 %v638_v30, %v630_v29 }
 0x223   : > { %v1363_v41 = vpack.c.bf16 %v640_v34, %v632_v33 }
 0x225   : > { %1280 = vmatpush1.bf16.msra.mxu0 %v1279_v43  ;;  %1344 = vmatpush1.bf16.msra.mxu1 %v1343_v44  ;;  %v654_v43 = vld [vmem:[#allocation5 + $0x660] sm:$0xff]  ;;  %v1301_v44 = vpack.c.bf16 %v655_v36, %v647_v35 }
 0x226   : > { %1282 = vmatprep.subr.bf16.mxu0 %v1281_v47  ;;  %1346 = vmatprep.subr.bf16.mxu1 %v1345_v48  ;;  %v656_v47 = vld [vmem:[#allocation5 + $0x670] sm:$0xff]  ;;  %v663_v48 = vld [vmem:[#allocation5 + $0x6a8] sm:$0xff]  ;;  %v1303_v52 = vpack.c.bf16 %v654_v43, %v646_v42 }
 0x227   : > { %v1367_v53 = vpack.c.bf16 %v656_v47, %v648_v46 }
 0x229   : > { %1284 = vmatpush1.bf16.msra.mxu0 %v1283_v55  ;;  %1348 = vmatpush1.bf16.msra.mxu1 %v1347_v56  ;;  %v670_v55 = vld [vmem:[#allocation5 + $0x6e0] sm:$0xff]  ;;  %v1305_v56 = vpack.c.bf16 %v671_v49, %v663_v48 }
 0x22a   : > { %1286 = vmatprep.subr.bf16.mxu0 %v1285_v59  ;;  %1350 = vmatprep.subr.bf16.mxu1 %v1349_v60  ;;  %v672_v59 = vld [vmem:[#allocation5 + $0x6f0] sm:$0xff]  ;;  %v679_v60 = vld [vmem:[#allocation5 + $0x728] sm:$0xff]  ;;  %v1307_v0 = vpack.c.bf16 %v670_v55, %v662_v54 }
 0x22b   : > { %v1371_v1 = vpack.c.bf16 %v672_v59, %v664_v58 }
 0x22d   : > { %1288 = vmatpush1.bf16.msra.mxu0 %v1287_v3  ;;  %1352 = vmatpush1.bf16.msra.mxu1 %v1351_v4  ;;  %v686_v3 = vld [vmem:[#allocation5 + $0x760] sm:$0xff]  ;;  %v1309_v4 = vpack.c.bf16 %v687_v61, %v679_v60 }
 0x22e   : > { %1290 = vmatprep.subr.bf16.mxu0 %v1289_v7  ;;  %1354 = vmatprep.subr.bf16.mxu1 %v1353_v8  ;;  %v688_v7 = vld [vmem:[#allocation5 + $0x770] sm:$0xff]  ;;  %v695_v8 = vld [vmem:[#allocation5 + $0x7a8] sm:$0xff]  ;;  %v1311_v12 = vpack.c.bf16 %v686_v3, %v678_v2 }
 0x22f   : > { %v1375_v13 = vpack.c.bf16 %v688_v7, %v680_v6 }
 0x231   : > { %1292 = vmatpush1.bf16.msra.mxu0 %v1291_v15  ;;  %1356 = vmatpush1.bf16.msra.mxu1 %v1355_v16  ;;  %v1313_v15 = vpack.c.bf16 %v703_v9, %v695_v8  ;;  %v1377_v16 = vpack.c.bf16 %v705_v11, %v697_v10 }
 0x232   : > { %1294 = vmatprep.subr.bf16.mxu0 %v1293_v19  ;;  %1358 = vmatprep.subr.bf16.mxu1 %v1357_v20  ;;  %v704_v19 = vld [vmem:[#allocation5 + $0x7f0] sm:$0xff]  ;;  %v1315_v20 = vpack.c.bf16 %v702_v17, %v694_v14 }
 0x233   : > { %v1379_v21 = vpack.c.bf16 %v704_v19, %v696_v18 }
 0x235   : > { %1296 = vmatpush1.bf16.msra.mxu0 %v1295_v27  ;;  %1360 = vmatpush1.bf16.msra.mxu1 %v1359_v28 }
 0x236   : > { %1298 = vmatprep.subr.bf16.mxu0 %v1297_v31  ;;  %1362 = vmatprep.subr.bf16.mxu1 %v1361_v32 }
 0x239   : > { %1300 = vmatpush1.bf16.msra.mxu0 %v1299_v40  ;;  %1364 = vmatpush1.bf16.msra.mxu1 %v1363_v41 }
 0x23a   : > { %1302 = vmatprep.subr.bf16.mxu0 %v1301_v44  ;;  %1366 = vmatprep.subr.bf16.mxu1 %v1365_v45 }
 0x23d   : > { %1304 = vmatpush1.bf16.msra.mxu0 %v1303_v52  ;;  %1368 = vmatpush1.bf16.msra.mxu1 %v1367_v53 }
 0x23e   : > { %1306 = vmatprep.subr.bf16.mxu0 %v1305_v56  ;;  %1370 = vmatprep.subr.bf16.mxu1 %v1369_v57 }
 0x241   : > { %1308 = vmatpush1.bf16.msra.mxu0 %v1307_v0  ;;  %1372 = vmatpush1.bf16.msra.mxu1 %v1371_v1 }
 0x242   : > { %1310 = vmatprep.subr.bf16.mxu0 %v1309_v4  ;;  %1374 = vmatprep.subr.bf16.mxu1 %v1373_v5 }
 0x245   : > { %1312 = vmatpush1.bf16.msra.mxu0 %v1311_v12  ;;  %1376 = vmatpush1.bf16.msra.mxu1 %v1375_v13 }
 0x246   : > { %1314 = vmatprep.subr.bf16.mxu0 %v1313_v15  ;;  %1378 = vmatprep.subr.bf16.mxu1 %v1377_v16 }
 0x249   : > { %1316 = vmatpush1.bf16.msra.mxu0 %v1315_v20  ;;  %1380 = vmatpush1.bf16.msra.mxu1 %v1379_v21 }
 0x24c   : > { %913 = vmatmul.mubr.f32.vlgmr.msra.gmra.mrb[4].mxu0 %v1777_v37  ;;  %984 = vmatmul.mubr.f32.vlgmr.msra.gmra.mrb[4].mxu1 %v1777_v37 }
 0x2df   : > { %v772_v22 = vpop.f32.mrb[2].mxu0  ;;  %v843_v23 = vpop.f32.mrb[2].mxu1 }
 0x2e0   : > { %v774_v24 = vpop.f32.mrb[3].mxu0  ;;  %v845_v25 = vpop.f32.mrb[3].mxu1 }
 0x2e1   : > { %v998_v26 = vcombine.low %v772_v22, %v774_v24  ;;  %v999_v27 = vcombine.low %v843_v23, %v845_v25 }
 0x2e3   : > { %1006 = vst [vmem:[%s282_s7] sm:$0xff] %v998_v26  ;;  %1007 = vst [vmem:[%s282_s7 + $0x8] sm:$0xff] %v999_v27 }
 0x31f   : > { %v914_v28 = vpop.f32.mrb[4].mxu0  ;;  %v985_v29 = vpop.f32.mrb[4].mxu1 }
 0x320   : > { %v916_v30 = vpop.f32.mrb[5].mxu0  ;;  %v987_v31 = vpop.f32.mrb[5].mxu1 }
 0x321   : > { %v1000_v32 = vcombine.low %v914_v28, %v916_v30  ;;  %v1001_v37 = vcombine.low %v985_v29, %v987_v31 }
 0x323   : > { %1008 = vst [vmem:[%s282_s7 + $0x10] sm:$0xff] %v1000_v32  ;;  %1009 = vst [vmem:[%s282_s7 + $0x18] sm:$0xff] %v1001_v37 }
 0x324   : > { %1514 = shalt.err (!%p1511_p7)
}
 0x325   : > { %s1515_s26 = scalar_lea.hbm %s1788_s29, 512  ;;  %s1519_s15 = scalar_lea.hbm %s1838_s6, 1024 }
 0x326   : > { %p1516_p9 = scmp.ne.s32.totalorder %s1788_s29, %s1515_s26  ;;  %p1520_p0 = scmp.lt.u32.totalorder %s1788_s29, %s1838_s6 }
 0x327   : > { %p1521_p1 = scmp.lt.u32.totalorder %s1519_s15, %s1515_s26  ;;  %p1523_p4 = scmp.lt.u32.totalorder %s1515_s26, %s1788_s29 }
 0x328   : > { %p1517_p2 = pnand %p1516_p9, %p1706_p12 }
 0x329   : > { %p1522_p11 = por %p1521_p1, %p1520_p0 }
 0x32a   : > { %p1518_p5 = pneg %p1517_p2 }
 0x32b   : > { %p1524_p6 = por %p1523_p4, %p1522_p11 }
 0x32d   : > { %p1525_p8 = pnand %p1524_p6, %p1518_p5 }
 0x32f   : > { %1528 = shalt.err (!%p1525_p8)
}
 0x330   : > { %1387 = dma.vmem_to_hbm [thread:$0]  (%p1706_p12), %s1790_s12, 512, %s1788_s29, %s1011_s25  }
 0x331 PF: > { %s1037_s30 = sand.u32 1, %s1559_s21   ;;  %p1853_p10 = scmp.ne.s32.totalorder %s1843_s28, 0 }
 0x332   : > { %p1854_p13 = scmp.ge.s32.totalorder %s1571_s24, 2  ;;  %s1038_s16 = scalar_lea.sflag [#allocation4], %s1037_s30 }
 0x334   : > { %p1398_p3 = pnand %p1854_p13, %p1853_p10 }
 0x336   : > { %1554 = dma.done.wait (!%p1398_p3), %s1038_s16, 512  }
 0x337   : > { %1556 = vsyncadd (!%p1398_p3), %s1038_s16, 4294966784  ;;  %p20_p7 = scmp.ge.s32.totalorder %s1671_s9, 4   ;;  %s1855_s21 = smov %s1563_s22 }
 0x338   : > { %s1856_s22 = smov %s1567_s23  ;;  %s1857_s23 = smov %s1702_s13 }
 0x339   : > { %s1858_s24 = smov %s1671_s9  ;;  %22 = sbr.rel (!%p20_p7) target bundleno = 6 (0x6), region = 93 }
 0x340   :  { %1043 = vsyncpa [#allocation3], 1 }
 0x341   :  { %1045 = vsyncpa [#allocation3 + $0x1], 1 }
 0x342   :  { %1046 = vsyncpa [#allocation6], 1 }
 0x343   :  { %1047 = vsyncpa [#allocation4], 1 }
 0x344   :  { %1049 = vsyncpa [#allocation4 + $0x1], 1 }

</bundles_post_ra>
